<compile_context>
chip_gen: v7x
topology: tpu7x:2x2x1
jax: 0.10.0
libtpu: 0.0.40
codegen_flags: <defaults>
</compile_context>

<pallas_src>
import functools

import jax
import jax.numpy as jnp
from jax import lax
from jax.experimental import pallas as pl
from jax.experimental.pallas import tpu as pltpu

EPS = 1e-3
_LANES = 128
_SUB = 128           # rows per register-accumulated sub-tile in the conv kernel


def _round_up(x, m):
    return ((x + m - 1) // m) * m


def _triple(v):
    if isinstance(v, (tuple, list)):
        assert len(v) == 3
        return tuple(int(i) for i in v)
    return (int(v),) * 3


def _vmem_limit_bytes():
    # Generation-aware scoped-VMEM budget (v5e/v6e: 128 MiB, v7x: 64 MiB/TC).
    try:
        cap = int(pltpu.get_tpu_info().vmem_capacity_bytes)
        return int(min(cap * 3 // 4, 100 * 1024 * 1024))
    except Exception:
        return 48 * 1024 * 1024


def _pick_row_tile(rows, total_parallel=1):
    # Prefer the largest tile that still yields >= 4 grid steps overall
    # (>= 2 steps per TensorCore on v7x) so double-buffering has work to hide.
    for cand in (1024, 512, 256, 128):
        if pl.cdiv(rows, cand) * total_parallel >= 4:
            return cand
    return 128


# -----------------------------------------------------------------------------
# Pointwise (1x1x1, stride 1, pad 0) kernel: plain tiled matmul + shift + ReLU
# -----------------------------------------------------------------------------
def _pointwise_kernel(x_ref, w_ref, shift_ref, o_ref):
    acc = jnp.dot(x_ref[...], w_ref[...], preferred_element_type=jnp.float32)
    o_ref[...] = jnp.maximum(acc + shift_ref[...], 0.0).astype(o_ref.dtype)


def _pointwise_conv_bn_relu(x_ndhwc, w2, shift2, cout):
    """x: (N,D,H,W,Cin) bf16; w2: (Cin,Cout_pad) bf16; shift2: (1,Cout_pad) f32."""
    N, D, H, W, Cin = x_ndhwc.shape
    Cout_pad = w2.shape[1]
    M = N * D * H * W
    x2 = x_ndhwc.reshape(M, Cin)              # free reshape, no HBM pad/slice
    tm = _pick_row_tile(M)

    out = pl.pallas_call(
        _pointwise_kernel,
        out_shape=jax.ShapeDtypeStruct((M, Cout_pad), jnp.float32),
        grid=(pl.cdiv(M, tm),),               # ragged last block handled by masking
        in_specs=[
            pl.BlockSpec((tm, Cin), lambda i: (i, 0)),
            pl.BlockSpec((Cin, Cout_pad), lambda i: (0, 0)),
            pl.BlockSpec((1, Cout_pad), lambda i: (0, 0)),
        ],
        out_specs=pl.BlockSpec((tm, Cout_pad), lambda i: (i, 0)),
        compiler_params=pltpu.CompilerParams(
            dimension_semantics=("parallel",),
            vmem_limit_bytes=_vmem_limit_bytes()),
    )(x2, w2, shift2)
    # TODO(synk): emit bf16 output if the downstream consumer accepts it
    # (halves output HBM writeback).
    return out[:, :cout].reshape(N, D, H, W, cout)


# -----------------------------------------------------------------------------
# General (KD,KH,KW), arbitrary-stride conv kernel
# -----------------------------------------------------------------------------
def _make_conv_kernel(n_taps, KH, KW, sd, sh, sw, Hq, Wq, TM, TN, WIN):
    """Direct conv on flattened stride-phase activations.

    x_hbm : (N, P, S_in, Cin) bf16 in HBM (flat phase-decomposed, zero padded)
    w_ref : (n_taps, Cin, TN) bf16 (BN scale folded in)
    o_ref : (1, TM, TN) f32 output block (rows = padded phase coordinates)
    xbuf  : (P, WIN, Cin) bf16 VMEM window for the current row tile
    """
    HqWq = Hq * Wq
    n_sub = TM // _SUB

    def kernel(x_hbm, w_ref, shift_ref, o_ref, xbuf, dma_sem):
        n = pl.program_id(0)
        r = pl.program_id(1)
        j = pl.program_id(2)

        # Fetch the activation window (all stride phases) for this row tile
        # once; it is reused by every Cout tile (j > 0).
        @pl.when(j == 0)
        def _():
            cp = pltpu.make_async_copy(
                x_hbm.at[n, :, pl.ds(r * TM, WIN), :], xbuf, dma_sem)
            cp.start()
            cp.wait()
        # TODO(synk): double-buffer this window DMA across row tiles so it
        # overlaps compute instead of being exposed at the top of each tile.

        shift = shift_ref[...]                              # (1, TN) f32

        for s in range(n_sub):                              # short static loop
            def tap_body(t, acc):
                kd = t // (KH * KW)
                rem = t % (KH * KW)
                kh = rem // KW
                kw = rem % KW
                # stride phase and constant flat row offset for this tap
                ph = (kd % sd) * (sh * sw) + (kh % sh) * sw + (kw % sw)
                off = (kd // sd) * HqWq + (kh // sh) * Wq + (kw // sw)
                patch = xbuf[ph, pl.ds(s * _SUB + off, _SUB), :]   # (SUB, Cin)
                return acc + jnp.dot(patch, w_ref[t],
                                     preferred_element_type=jnp.float32)

            acc = lax.fori_loop(0, n_taps, tap_body,
                                jnp.zeros((_SUB, TN), jnp.float32))
            o_ref[0, pl.ds(s * _SUB, _SUB), :] = jnp.maximum(
                acc + shift, 0.0).astype(o_ref.dtype)

    return kernel


def _general_conv_bn_relu(x_ndhwc, w_dhwio, shift, ks, st, pd):
    """(KD,KH,KW) conv with arbitrary stride + BN shift + ReLU, NDHWC bf16 in."""
    N, D, H, W, Cin = x_ndhwc.shape
    KD, KH, KW = ks
    sd, sh, sw = st
    Cout = w_dhwio.shape[-1]
    Cout_pad = _round_up(Cout, _LANES)
    TN = _LANES
    n_taps = KD * KH * KW

    # Conv zero padding (one materialized copy).
    # TODO(synk): fold boundary handling into the kernel (masked taps) to
    # avoid this extra activation pass.
    if pd != (0, 0, 0):
        x_ndhwc = jnp.pad(
            x_ndhwc,
            ((0, 0), (pd[0], pd[0]), (pd[1], pd[1]), (pd[2], pd[2]), (0, 0)))
    Dp, Hp, Wp = D + 2 * pd[0], H + 2 * pd[1], W + 2 * pd[2]
    DO = (Dp - KD) // sd + 1
    HO = (Hp - KH) // sh + 1
    WO = (Wp - KW) // sw + 1

    # Stride phase decomposition:
    #   x_ph[n, p, dq*Hq*Wq + hq*Wq + wq, c] = x_pad[n, dq*sd+pd, hq*sh+ph,
    #   wq*sw+pw, c], so each tap becomes a constant flat row offset into one
    #   phase (contiguous shift-and-matmul; no in-kernel relayout copies).
    Dq, Hq, Wq = -(-Dp // sd), -(-Hp // sh), -(-Wp // sw)
    P = sd * sh * sw
    x_p = jnp.pad(
        x_ndhwc,
        ((0, 0), (0, Dq * sd - Dp), (0, Hq * sh - Hp), (0, Wq * sw - Wp),
         (0, 0)))
    x_ph = x_p.reshape(N, Dq, sd, Hq, sh, Wq, sw, Cin)
    x_ph = x_ph.transpose(0, 2, 4, 6, 1, 3, 5, 7).reshape(
        N, P, Dq * Hq * Wq, Cin)

    R = DO * Hq * Wq                       # output rows in phase coordinates
    maxoff = (((KD - 1) // sd) * Hq * Wq + ((KH - 1) // sh) * Wq
              + (KW - 1) // sw)

    TM = _pick_row_tile(R, total_parallel=N)
    # Keep the DMA window comfortably inside VMEM.
    while TM > _SUB and P * (TM + maxoff) * Cin * 2 > 6 * 1024 * 1024:
        TM //= 2
    NR = pl.cdiv(R, TM)
    R_pad = NR * TM
    WIN = TM + maxoff
    S_in = _round_up(max(Dq * Hq * Wq, R_pad + maxoff), 8)
    if S_in > Dq * Hq * Wq:
        x_ph = jnp.pad(x_ph, ((0, 0), (0, 0), (0, S_in - Dq * Hq * Wq),
                              (0, 0)))

    # Weights: (KD,KH,KW,Cin,Cout) -> (n_taps, Cin, Cout_pad), lane-dense Cout.
    w3 = w_dhwio.reshape(n_taps, Cin, Cout)
    if Cout_pad != Cout:
        w3 = jnp.pad(w3, ((0, 0), (0, 0), (0, Cout_pad - Cout)))
        shift = jnp.pad(shift, ((0, Cout_pad - Cout),))
    shift2 = shift.reshape(1, Cout_pad).astype(jnp.float32)
    NJ = Cout_pad // TN

    kernel = _make_conv_kernel(n_taps, KH, KW, sd, sh, sw, Hq, Wq, TM, TN, WIN)

    out = pl.pallas_call(
        kernel,
        out_shape=jax.ShapeDtypeStruct((N, R_pad, Cout_pad), jnp.float32),
        grid=(N, NR, NJ),
        in_specs=[
            pl.BlockSpec(memory_space=pl.ANY),                  # flat phases
            pl.BlockSpec((n_taps, Cin, TN), lambda n, r, j: (0, 0, j)),
            pl.BlockSpec((1, TN), lambda n, r, j: (0, j)),
        ],
        out_specs=pl.BlockSpec((1, TM, TN), lambda n, r, j: (n, r, j)),
        scratch_shapes=[
            pltpu.VMEM((P, WIN, Cin), jnp.bfloat16),
            pltpu.SemaphoreType.DMA,
        ],
        compiler_params=pltpu.CompilerParams(
            dimension_semantics=("parallel", "parallel", "arbitrary"),
            vmem_limit_bytes=_vmem_limit_bytes()),
    )(x_ph.astype(jnp.bfloat16), w3, shift2)

    # Drop padded rows / channels and the over-computed (hq>=HO, wq>=WO) rows.
    y = out[:, :R, :Cout].reshape(N, DO, Hq, Wq, Cout)[:, :, :HO, :WO, :]
    return y


# -----------------------------------------------------------------------------
# BasicConv3d forward (PyTorch NCDHW in / NCDHW out)
# -----------------------------------------------------------------------------
def basic_conv3d_forward(x_ncdhw, params, kernel_size, stride, padding=0):
    """Conv3d(bias=False) -> BatchNorm3d(eps=1e-3, inference) -> ReLU."""
    ks, st, pd = _triple(kernel_size), _triple(stride), _triple(padding)
    w = params["w"]                                   # (Cout, Cin, kd, kh, kw)
    Cout, Cin = w.shape[0], w.shape[1]
    assert tuple(w.shape[2:]) == ks

    # Fold inference BatchNorm into the conv: scale -> weights, so only
    # "+ shift" and ReLU remain in the kernel epilogue.
    scale = params["gamma"] * jax.lax.rsqrt(params["var"] + EPS)      # (Cout,)
    shift = (params["beta"] - params["mean"] * scale).astype(jnp.float32)
    w_dhwio = jnp.transpose(w, (2, 3, 4, 1, 0))       # (kd, kh, kw, Cin, Cout)
    w_folded = (w_dhwio * scale).astype(jnp.bfloat16)  # bf16 MXU operand

    # NCDHW -> NDHWC (channels on the 128-wide lane axis), bf16 activations.
    x = jnp.transpose(x_ncdhw, (0, 2, 3, 4, 1)).astype(jnp.bfloat16)

    if ks == (1, 1, 1) and st == (1, 1, 1) and pd == (0, 0, 0):
        Cout_pad = _round_up(Cout, _LANES)
        w2 = w_folded.reshape(Cin, Cout)
        shift_p = shift
        if Cout_pad != Cout:
            w2 = jnp.pad(w2, ((0, 0), (0, Cout_pad - Cout)))
            shift_p = jnp.pad(shift_p, ((0, Cout_pad - Cout),))
        y = _pointwise_conv_bn_relu(x, w2, shift_p.reshape(1, Cout_pad), Cout)
    else:
        y = _general_conv_bn_relu(x, w_folded, shift, ks, st, pd)

    return jnp.transpose(y, (0, 4, 1, 2, 3))          # back to NCDHW, f32


# -----------------------------------------------------------------------------
# Pure-JAX reference (same bf16 operand rounding as the kernels)
# -----------------------------------------------------------------------------
def reference_forward(x_ncdhw, params, kernel_size, stride, padding):
    ks, st, pd = _triple(kernel_size), _triple(stride), _triple(padding)
    w = params["w"]
    scale = params["gamma"] * jax.lax.rsqrt(params["var"] + EPS)
    shift = params["beta"] - params["mean"] * scale
    w_f = (w * scale[:, None, None, None, None]
           ).astype(jnp.bfloat16).astype(jnp.float32)
    x_f = x_ncdhw.astype(jnp.bfloat16).astype(jnp.float32)
    y = jax.lax.conv_general_dilated(
        x_f, w_f, window_strides=st, padding=[(p, p) for p in pd],
        dimension_numbers=("NCDHW", "OIDHW", "NCDHW"),
        precision=jax.lax.Precision.HIGHEST)
    y = y + shift[None, :, None, None, None]
    return jnp.maximum(y, 0.0)


# -----------------------------------------------------------------------------
# Demo / self-check
# -----------------------------------------------------------------------------
if __name__ == "__main__":
    key = jax.random.PRNGKey(0)

    def make_params(k, cin, cout, ks):
        kd, kh, kw = ks
        k1, k2, k3, k4, k5 = jax.random.split(k, 5)
        fan_in = float(cin * kd * kh * kw)
        return dict(
            w=jax.random.normal(k1, (cout, cin, kd, kh, kw), jnp.float32)
              / jnp.sqrt(fan_in),
            gamma=1.0 + 0.1 * jax.random.normal(k2, (cout,), jnp.float32),
            beta=0.1 * jax.random.normal(k3, (cout,), jnp.float32),
            mean=0.1 * jax.random.normal(k4, (cout,), jnp.float32),
            var=jnp.abs(jax.random.normal(k5, (cout,), jnp.float32)) + 0.5,
        )

    N, D, H, W = 2, 4, 8, 8
    configs = [
        # (name, Cin, Cout, kernel_size, stride, padding)
        ("conv1x1x1", 64, 96, (1, 1, 1), (1, 1, 1), (0, 0, 0)),  # S3D usage
        ("conv3x3x3", 32, 64, (3, 3, 3), (1, 1, 1), (1, 1, 1)),
        ("conv1x3x3_stride2", 32, 48, (1, 3, 3), (1, 2, 2), (0, 1, 1)),
    ]

    for name, cin, cout, ks, st, pdg in configs:
        key, kx, kp = jax.random.split(key, 3)
        x = jax.random.normal(kx, (N, cin, D, H, W), jnp.float32)
        params = make_params(kp, cin, cout, ks)

        fwd = jax.jit(functools.partial(
            basic_conv3d_forward, kernel_size=ks, stride=st, padding=pdg))
        out = jax.block_until_ready(fwd(x, params))
        ref = jax.block_until_ready(reference_forward(x, params, ks, st, pdg))

        assert out.shape == ref.shape, (name, out.shape, ref.shape)
        assert out.dtype == jnp.float32, (name, out.dtype)
        assert bool(jnp.all(jnp.isfinite(out))), name
        err = float(jnp.max(jnp.abs(out - ref)))
        assert err < 1e-2, (name, err)

    print("KERNEL_OK")
</pallas_src>

<mosaic_0001>
module attributes {stable_mosaic.version = 11 : i64} {
  func.func @_pointwise_kernel(%arg0: i32, %arg1: memref<128x64xbf16, #tpu.memory_space<vmem>>, %arg2: memref<64x128xbf16, #tpu.memory_space<vmem>>, %arg3: memref<1x128xf32, #tpu.memory_space<vmem>>, %arg4: memref<128x128xf32, #tpu.memory_space<vmem>>) attributes {dimension_semantics = [#tpu.dimension_semantics<parallel>], iteration_bounds = array<i64: 4>, scalar_prefetch = 0 : i64, scratch_operands = 0 : i64, tpu.core_type = #tpu.core_type<tc>, window_params = [{transform_indices = @transform_0, window_bounds = array<i64: 128, 64>}, {pipeline_mode = #tpu.pipeline_mode<synchronous>, transform_indices = @transform_1, window_bounds = array<i64: 64, 128>}, {pipeline_mode = #tpu.pipeline_mode<synchronous>, transform_indices = @transform_2, window_bounds = array<i64: 1, 128>}, {transform_indices = @transform_3, window_bounds = array<i64: 128, 128>}]} {
    %c0 = arith.constant 0 : index
    %c0_0 = arith.constant 0 : index
    %0 = vector.load %arg1[%c0, %c0_0] : memref<128x64xbf16, #tpu.memory_space<vmem>>, vector<128x64xbf16>
    %c0_1 = arith.constant 0 : index
    %c0_2 = arith.constant 0 : index
    %1 = vector.load %arg2[%c0_1, %c0_2] : memref<64x128xbf16, #tpu.memory_space<vmem>>, vector<64x128xbf16>
    %cst = arith.constant dense<0.000000e+00> : vector<128x128xf32>
    %2 = tpu.matmul %0, %1, %cst {dimension_numbers = #tpu.dot_dimension_numbers<[1], [0], [0], [1], [0, 0, 1, 1], [], []>} : vector<128x64xbf16>, vector<64x128xbf16>, vector<128x128xf32> -> vector<128x128xf32>
    %c0_3 = arith.constant 0 : index
    %c0_4 = arith.constant 0 : index
    %3 = vector.load %arg3[%c0_3, %c0_4] : memref<1x128xf32, #tpu.memory_space<vmem>>, vector<1x128xf32>
    %4 = vector.broadcast %3 : vector<1x128xf32> to vector<128x128xf32>
    %5 = arith.addf %2, %4 : vector<128x128xf32>
    %cst_5 = arith.constant 0.000000e+00 : f32
    %6 = vector.broadcast %cst_5 : f32 to vector<128x128xf32>
    %7 = arith.maximumf %5, %6 : vector<128x128xf32>
    %c0_6 = arith.constant 0 : index
    %c0_7 = arith.constant 0 : index
    %8 = vector.load %arg4[%c0_6, %c0_7] : memref<128x128xf32, #tpu.memory_space<vmem>>, vector<128x128xf32>
    tpu.vector_store %arg4[%c0_6, %c0_7], %7 {strides = array<i32>} : memref<128x128xf32, #tpu.memory_space<vmem>>, vector<128x128xf32>,
    return
  }
  func.func @transform_0(%arg0: i32) -> (i32, i32) {
    %c0_i32 = arith.constant 0 : i32
    %c0_i32_0 = arith.constant 0 : i32
    return %arg0, %c0_i32 : i32, i32
  }
  func.func @transform_1(%arg0: i32) -> (i32, i32) {
    %c0_i32 = arith.constant 0 : i32
    %c0_i32_0 = arith.constant 0 : i32
    %c0_i32_1 = arith.constant 0 : i32
    return %c0_i32, %c0_i32_0 : i32, i32
  }
  func.func @transform_2(%arg0: i32) -> (i32, i32) {
    %c0_i32 = arith.constant 0 : i32
    %c0_i32_0 = arith.constant 0 : i32
    %c0_i32_1 = arith.constant 0 : i32
    return %c0_i32, %c0_i32_0 : i32, i32
  }
  func.func @transform_3(%arg0: i32) -> (i32, i32) {
    %c0_i32 = arith.constant 0 : i32
    %c0_i32_0 = arith.constant 0 : i32
    return %arg0, %c0_i32 : i32, i32
  }
}

</mosaic_0001>

<bundles_post_ra>
// kernel: basic_conv3d_forward.1
= control target key start
LH: loop header
LB: loop body
LE: loop exit
PB: predicated region body
PF: predicated region fallthrough
CT: control target
= control target key end

     0   :  { %8 = vsyncpa [#allocation3], 0  ;;  %s864_s0 = inlined_call_operand.vmem [shape: bf16[512,64], index: 0, kind: input, shape index: {}]   ;;  %s865_s1 = inlined_call_operand.vmem [shape: bf16[64,128], index: 1, kind: input, shape index: {}]   ;;  %s866_s2 = inlined_call_operand.vmem [shape: f32[1,128], index: 2, kind: input, shape index: {}]   ;;  %s867_s3 = inlined_call_operand.hbm [shape: f32[512,128], index: 3, kind: output, shape index: {}]  }
   0x1   :  { %10 = vsyncpa [#allocation3 + $0x1], 0  ;;  %s716_s12 = smov 0   ;;  %s718_s13 = smov 0  }
   0x2   :  { %s720_s14 = smov 0   ;;  %s722_s15 = smov 0  }
   0x3 LB: > { %s737_s16 = sadd.s32 4294967295, %s691_s15   ;;  %s498_s17 = sadd.s32 4294967294, %s691_s15   ;;  %s691_s15 = sphi %s722_s15, %s873_s15   ;;  %s687_s14 = sphi %s720_s14, %s872_s14   ;;  %s683_s13 = sphi %s718_s13, %s871_s13   ;;  %s679_s12 = sphi %s716_s12, %s870_s12  }
   0x4   : > { %s741_s18 = sadd.s32 1, %s691_s15   ;;  %s91_s19 = sadd.s32 1, %s687_s14 }
   0x5   : > { %s88_s20 = ssub.s32 %s691_s15, %s741_s18  ;;  %p101_p0 = scmp.ne.s32.totalorder %s687_s14, %s683_s13 }
   0x6   : > { %p89_p1 = scmp.eq.s32.totalorder %s88_s20, 0  ;;  %p102_p2 = scmp.eq.s32.totalorder %s737_s16, 3 }
   0x7   : > { %p107_p3 = scmp.ne.s32.totalorder %s683_s13, %s679_s12  ;;  %p108_p4 = scmp.eq.s32.totalorder %s498_s17, 3 }
   0x8   : > { %s752_s21 = scalar_select %p89_p1, %s687_s14, %s91_s19  }
   0x9   : > { %p754_p5 = por %p102_p2, %p101_p0  ;;  %p758_p6 = por %p108_p4, %p107_p3 }
   0xa   : > { %p501_p7 = scmp.ge.s32.totalorder %s691_s15, 1  ;;  %p141_p8 = scmp.lt.s32.totalorder %s691_s15, 5 }
   0xc   : > { %p142_p9 = pnand %p501_p7, %p141_p8 }
   0xd   : > { %v617_v0 = vld [vmem:[%s865_s1] sm:$0xff] (!%p142_p9)   ;;  %s503_s26 = sshll.u32 (!%p142_p9), %s737_s16, 4  ;;  %v618_v1 = vld [vmem:[%s865_s1 + $0x8] sm:$0xff] (!%p142_p9)   ;;  %v619_v2 = vld [vmem:[%s865_s1 + $0x10] sm:$0xff] (!%p142_p9)   ;;  %vm268_vm0 = vcmask (!%p142_p9), 523264   ;;  %s162_s10 = sand.u32 (!%p142_p9), 1, %s683_s13  }
   0xe   : > { %145 = sbr.rel (%p142_p9) target bundleno = 272 (0x110), region = 32  ;;  %p166_p10 = scmp.lt.s32.totalorder (!%p142_p9), %s503_s26, 63  ;;  %544 = vmatprep.subr.bf16.mxu0 (!%p142_p9), %v617_v0  ;;  %568 = vmatprep.subr.bf16.mxu1 (!%p142_p9), %v617_v0  ;;  %v620_v3 = vld [vmem:[%s865_s1 + $0x18] sm:$0xff] (!%p142_p9)   ;;  %v505_v12 = vld [vmem:[%s866_s2] ss:$0 sm:$0xff] (!%p142_p9) }
   0xf   : > { %545 = vmatpush3.bf16.msra.mxu0 (!%p142_p9), %v617_v0  ;;  %572 = vmatpush3.bf16.msra.mxu1 (!%p142_p9), %v617_v0  ;;  %s502_s19 = sshll.u32 (!%p142_p9), %s162_s10, 7  ;;  %s531_s24 = sshll.u32 (!%p142_p9), %s737_s16, 11 }
  0x10   : > { %546 = vmatprep.subr.bf16.mxu0 (!%p142_p9), %v618_v1  ;;  %569 = vmatprep.subr.bf16.mxu1 (!%p142_p9), %v618_v1  ;;  %s794_s20 = scalar_lea.vmem (!%p142_p9), [#allocation2], %s502_s19  ;;  %s811_s27 = scalar_lea.hbm (!%p142_p9), %s867_s3, %s531_s24 }
  0x11   : > { %s436_s25 = sshll.u32 (!%p142_p9), %s794_s20, 4  ;;  %s823_s28 = scalar_lea.sflag (!%p142_p9), [#allocation3], %s162_s10  ;;  %s813_s25 = int_to_ptr.vmem [resolvable:$true] %s436_s25 }
  0x12   : > { %s629_s29 = scalar_lea.vmem (!%p142_p9), %s813_s25, 2048  ;;  %s693_s30 = smov (!%p142_p9), [#allocation2]  }
  0x13   : > { %547 = vmatpush3.bf16.msra.mxu0 (!%p142_p9), %v618_v1  ;;  %573 = vmatpush3.bf16.msra.mxu1 (!%p142_p9), %v618_v1  ;;  %p630_p11 = scmp.ne.s32.totalorder (!%p142_p9), %s813_s25, %s629_s29 }
  0x14   : > { %548 = vmatprep.subr.bf16.mxu0 (!%p142_p9), %v619_v2  ;;  %570 = vmatprep.subr.bf16.mxu1 (!%p142_p9), %v619_v2 }
  0x15   : > { %s875_s26 = smov (!%p166_p10, %s503_s26), 63  ;;  %p631_p12 = pnand %p630_p11, %p754_p5 }
  0x16   : > { %s504_s4 = sshll.u32 %s875_s26, 2 }
  0x17   : > { %s169_s9 = scalar_lea.vmem %s864_s0, %s504_s4  ;;  %549 = vmatpush3.bf16.msra.mxu0 %v619_v2  ;;  %574 = vmatpush3.bf16.msra.mxu1 %v619_v2  ;;  %p632_p13 = pneg %p631_p12 }
  0x18   : > { %v621_v4 = vld [vmem:[%s169_s9] sm:$0xff]   ;;  %550 = vmatprep.subr.bf16.mxu0 %v620_v3  ;;  %571 = vmatprep.subr.bf16.mxu1 %v620_v3  ;;  %v623_v6 = vld [vmem:[%s169_s9 + $0x8] sm:$0xff]   ;;  %v625_v8 = vld [vmem:[%s169_s9 + $0x10] sm:$0xff]   ;;  %s633_s4 = sshll.u32 %s693_s30, 4  ;;  %s634_s4 = int_to_ptr.vmem [resolvable:$false] %s633_s4 }
  0x19   : > { %v622_v5 = vld [vmem:[%s169_s9 + $0x20] sm:$0xff]   ;;  %552 = vmatprep.mubr.msk.bf16.mxu0 %vm268_vm0, %v621_v4  ;;  %v624_v7 = vld [vmem:[%s169_s9 + $0x28] sm:$0xff]   ;;  %v626_v9 = vld [vmem:[%s169_s9 + $0x30] sm:$0xff]   ;;  %s635_s5 = scalar_lea.vmem %s634_s4, 4096  ;;  %p636_p0 = scmp.lt.s32.totalorder %s813_s25, %s634_s4 }
  0x1a   : > { %560 = vmatprep.mubr.msk.bf16.mxu1 %vm268_vm0, %v622_v5  ;;  %v627_v10 = vld [vmem:[%s169_s9 + $0x18] sm:$0xff]   ;;  %p637_p1 = scmp.lt.s32.totalorder %s635_s5, %s629_s29 }
  0x1b   : > { %551 = vmatpush3.bf16.msra.mxu0 %v620_v3  ;;  %575 = vmatpush3.bf16.msra.mxu1 %v620_v3  ;;  %v628_v11 = vld [vmem:[%s169_s9 + $0x38] sm:$0xff]  }
  0x1c   : > { %p638_p2 = por %p637_p1, %p636_p0 }
  0x1e   : > { %553 = vmatmul.mubr.msk.bf16.vlgmr.msra.gmra.mrb[0].mxu0 %vm268_vm0, %v623_v6  ;;  %561 = vmatmul.mubr.msk.bf16.vlgmr.msra.gmra.mrb[0].mxu1 %vm268_vm0, %v624_v7  ;;  %p639_p3 = pnand %p638_p2, %p632_p13 }
  0x1f   : > { %556 = vmatprep.mubr.msk.bf16.mxu0 %vm268_vm0, %v625_v8  ;;  %564 = vmatprep.mubr.msk.bf16.mxu1 %vm268_vm0, %v626_v9 }
  0x26   : > { %557 = vmatmul.mubr.msk.bf16.gmra.mrb[4].mxu0 %vm268_vm0, %v627_v10  ;;  %565 = vmatmul.mubr.msk.bf16.gmra.mrb[4].mxu1 %vm268_vm0, %v628_v11 }
  0xf1   : > { %v554_v13 = vpop.f32.mrb[0].mxu0  ;;  %v562_v14 = vpop.f32.mrb[0].mxu1 }
  0xf2   : > { %v336_v15 = vadd.f32 %v554_v13, %v505_v12  ;;  %v368_v16 = vadd.f32 %v562_v14, %v505_v12  ;;  %v327_v17 = vpop.f32.mrb[1].mxu0  ;;  %v359_v18 = vpop.f32.mrb[1].mxu1 }
  0xf3   : > { %v328_v19 = vadd.f32 %v505_v12, %v327_v17  ;;  %v360_v20 = vadd.f32 %v505_v12, %v359_v18  ;;  %v555_v21 = vpop.f32.mrb[2].mxu0  ;;  %v563_v22 = vpop.f32.mrb[2].mxu1 }
  0xf4   : > { %v392_v23 = vmax.f32 %v336_v15, 0.0  ;;  %v400_v24 = vmax.f32 %v368_v16, 0.0  ;;  %v339_v25 = vadd.f32 %v555_v21, %v505_v12  ;;  %v371_v26 = vadd.f32 %v563_v22, %v505_v12  ;;  %v330_v27 = vpop.f32.mrb[3].mxu0  ;;  %v362_v28 = vpop.f32.mrb[3].mxu1 }
  0xf5   : > { %v390_v29 = vmax.f32 %v328_v19, 0.0  ;;  %v398_v30 = vmax.f32 %v360_v20, 0.0  ;;  %v331_v31 = vadd.f32 %v505_v12, %v330_v27  ;;  %v363_v32 = vadd.f32 %v505_v12, %v362_v28 }
  0xf6   : > { %408 = vst [vmem:[%s794_s20 + $0x10] sm:$0xff] %v392_v23  ;;  %416 = vst [vmem:[%s794_s20 + $0x50] sm:$0xff] %v400_v24  ;;  %v393_v33 = vmax.f32 %v339_v25, 0.0  ;;  %v401_v34 = vmax.f32 %v371_v26, 0.0 }
  0xf7   : > { %406 = vst [vmem:[%s794_s20] sm:$0xff] %v390_v29  ;;  %414 = vst [vmem:[%s794_s20 + $0x40] sm:$0xff] %v398_v30  ;;  %v391_v35 = vmax.f32 %v331_v31, 0.0  ;;  %v399_v36 = vmax.f32 %v363_v32, 0.0 }
  0xf8   : > { %409 = vst [vmem:[%s794_s20 + $0x18] sm:$0xff] %v393_v33  ;;  %417 = vst [vmem:[%s794_s20 + $0x58] sm:$0xff] %v401_v34 }
  0xf9   : > { %407 = vst [vmem:[%s794_s20 + $0x8] sm:$0xff] %v391_v35  ;;  %415 = vst [vmem:[%s794_s20 + $0x48] sm:$0xff] %v399_v36  ;;  %v558_v37 = vpop.f32.mrb[4].mxu0  ;;  %v566_v38 = vpop.f32.mrb[4].mxu1 }
  0xfa   : > { %v352_v39 = vadd.f32 %v558_v37, %v505_v12  ;;  %v384_v40 = vadd.f32 %v566_v38, %v505_v12  ;;  %v343_v41 = vpop.f32.mrb[5].mxu0  ;;  %v375_v42 = vpop.f32.mrb[5].mxu1 }
  0xfb   : > { %v344_v43 = vadd.f32 %v505_v12, %v343_v41  ;;  %v376_v44 = vadd.f32 %v505_v12, %v375_v42  ;;  %v559_v45 = vpop.f32.mrb[6].mxu0  ;;  %v567_v46 = vpop.f32.mrb[6].mxu1 }
  0xfc   : > { %v396_v47 = vmax.f32 %v352_v39, 0.0  ;;  %v404_v48 = vmax.f32 %v384_v40, 0.0  ;;  %v355_v49 = vadd.f32 %v559_v45, %v505_v12  ;;  %v387_v50 = vadd.f32 %v567_v46, %v505_v12  ;;  %v346_v51 = vpop.f32.mrb[7].mxu0  ;;  %v378_v52 = vpop.f32.mrb[7].mxu1 }
  0xfd   : > { %v394_v53 = vmax.f32 %v344_v43, 0.0  ;;  %v402_v54 = vmax.f32 %v376_v44, 0.0  ;;  %v347_v55 = vadd.f32 %v505_v12, %v346_v51  ;;  %v379_v56 = vadd.f32 %v505_v12, %v378_v52 }
  0xfe   : > { %412 = vst [vmem:[%s794_s20 + $0x30] sm:$0xff] %v396_v47  ;;  %420 = vst [vmem:[%s794_s20 + $0x70] sm:$0xff] %v404_v48  ;;  %v397_v57 = vmax.f32 %v355_v49, 0.0  ;;  %v405_v58 = vmax.f32 %v387_v50, 0.0 }
  0xff   : > { %410 = vst [vmem:[%s794_s20 + $0x20] sm:$0xff] %v394_v53  ;;  %418 = vst [vmem:[%s794_s20 + $0x60] sm:$0xff] %v402_v54  ;;  %v395_v59 = vmax.f32 %v347_v55, 0.0  ;;  %v403_v60 = vmax.f32 %v379_v56, 0.0 }
 0x100   : > { %413 = vst [vmem:[%s794_s20 + $0x38] sm:$0xff] %v397_v57  ;;  %421 = vst [vmem:[%s794_s20 + $0x78] sm:$0xff] %v405_v58 }
 0x101   : > { %411 = vst [vmem:[%s794_s20 + $0x28] sm:$0xff] %v395_v59  ;;  %419 = vst [vmem:[%s794_s20 + $0x68] sm:$0xff] %v403_v60 }
 0x102   : > { %642 = shalt.err (!%p639_p3)
}
 0x103   : > { %s643_s6 = scalar_lea.hbm %s811_s27, 2048  ;;  %s647_s9 = scalar_lea.hbm %s867_s3, 8192 }
 0x104   : > { %p644_p4 = scmp.ne.s32.totalorder %s811_s27, %s643_s6  ;;  %p648_p9 = scmp.lt.u32.totalorder %s811_s27, %s867_s3 }
 0x105   : > { %p649_p10 = scmp.lt.u32.totalorder %s647_s9, %s643_s6  ;;  %p651_p12 = scmp.lt.u32.totalorder %s643_s6, %s811_s27 }
 0x106   : > { %p645_p7 = pnand %p644_p4, %p754_p5 }
 0x107   : > { %p650_p11 = por %p649_p10, %p648_p9 }
 0x108   : > { %p646_p8 = pneg %p645_p7 }
 0x109   : > { %p652_p13 = por %p651_p12, %p650_p11 }
 0x10b   : > { %p653_p0 = pnand %p652_p13, %p646_p8 }
 0x10d   : > { %656 = shalt.err (!%p653_p0)
}
 0x10e   : > { %s694_s17 = smov 128   ;;  %s695_s19 = smov 8  }
 0x10f   : > { %576 = dma.vmem_to_hbm [thread:$0]  (%p754_p5), %s813_s25, 2048, %s811_s27, %s823_s28, %s694_s17, %s694_s17, %s695_s19  }
 0x110 PF: > { %p582_p1 = scmp.ge.s32.totalorder %s691_s15, 2  ;;  %s451_s20 = sand.u32 1, %s679_s12  }
 0x111   : > { %s452_s24 = scalar_lea.sflag [#allocation3], %s451_s20 }
 0x112   : > { %p579_p2 = pnand %p582_p1, %p758_p6 }
 0x114   : > { %674 = dma.done.wait (!%p579_p2), %s452_s24, 2048  }
 0x115   : > { %676 = vsyncadd (!%p579_p2), %s452_s24, 4294965248  ;;  %p13_p3 = scmp.ge.s32.totalorder %s741_s18, 6   ;;  %s870_s12 = smov %s683_s13 }
 0x116   : > { %s871_s13 = smov %s687_s14  ;;  %s872_s14 = smov %s752_s21 }
 0x117   : > { %s873_s15 = smov %s741_s18  ;;  %15 = sbr.rel (!%p13_p3) target bundleno = 3 (0x3), region = 67 }
 0x11e   :  { %457 = vsyncpa [#allocation3], 1 }
 0x11f   :  { %459 = vsyncpa [#allocation3 + $0x1], 1 }

</bundles_post_ra>
